<compile_context>
chip_gen: v7x
topology: tpu7x:2x2x1
jax: 0.10.0
libtpu: 0.0.40
codegen_flags: <defaults>
</compile_context>

<pallas_src>
import numpy as np
import jax
import jax.numpy as jnp
from jax.experimental import pallas as pl
from jax.experimental.pallas import tpu as pltpu

_LANE = 128
_TARGET_BLOCK_BYTES = 4 * 1024 * 1024    # ~4 MiB per x block (v6e/v7x sweet spot)
_VMEM_LIMIT_BYTES = 32 * 1024 * 1024     # explicit: covers double-buffered x/out/pos on all gens
_MAX_ROWS_FULL_WIDTH = 256               # row cap when the column tile spans the full width
_MAX_ROWS_STRIDED = 32                   # row cap when column tile is strided (long runs > many runs)
_MIN_GRID_STEPS = 4                      # pipeline depth + v7x two-TC extent


def _get_sinusoid_encoding_table(n_position: int, dim_hid: int) -> jnp.ndarray:
    """Deterministic sinusoid table, identical math to the PyTorch module."""
    pos = np.arange(n_position, dtype=np.float64)[:, None]              # (P, 1)
    hid = np.arange(dim_hid, dtype=np.int64)[None, :]                   # (1, D)
    angle = pos / np.power(10000.0, 2.0 * (hid // 2) / float(dim_hid))  # (P, D)
    table = np.array(angle)
    table[:, 0::2] = np.sin(table[:, 0::2])
    table[:, 1::2] = np.cos(table[:, 1::2])
    return jnp.asarray(table, dtype=jnp.float32)                        # (P, D)


def _pos_add_kernel(x_ref, pos_ref, o_ref):
    # flat: x (rt, ct) + pos (1, ct);  fold: x (1, rt, D) + pos (rt, D).
    o_ref[...] = x_ref[...] + pos_ref[...]


def _choose_tiles_flat(n_rows: int, n_cols: int, itemsize: int):
    """Tiles for the (B, S*D) layout, satisfying the (8,128)/full-dim block rule."""
    # Column tile first: prefer long contiguous runs per DMA descriptor.
    if n_cols <= _LANE:
        col_tile = n_cols
    else:
        max_cols = max(_LANE, (_TARGET_BLOCK_BYTES // (8 * itemsize)) // _LANE * _LANE)
        col_tile = min(n_cols, max_cols)
    # Row tile: fill the remaining byte budget.  With a full-width column tile
    # consecutive rows are contiguous in HBM, so a taller block is free;
    # otherwise keep the block short (few, long strided runs).
    if n_rows <= 8:
        rows_tile = n_rows
    else:
        row_cap = _MAX_ROWS_FULL_WIDTH if col_tile == n_cols else _MAX_ROWS_STRIDED
        rows_budget = max(8, _TARGET_BLOCK_BYTES // (col_tile * itemsize))
        rows_tile = max(8, min(n_rows, row_cap, rows_budget) // 8 * 8)

    # Grid-depth guard: shrink rows first, then columns (keep >= 512 lanes).
    def steps(rt, ct):
        return pl.cdiv(n_rows, rt) * pl.cdiv(n_cols, ct)

    while steps(rows_tile, col_tile) < _MIN_GRID_STEPS and rows_tile >= 16 and rows_tile % 8 == 0:
        rows_tile = max(8, (rows_tile // 2) // 8 * 8)
    while steps(rows_tile, col_tile) < _MIN_GRID_STEPS and col_tile >= 8 * _LANE and col_tile % _LANE == 0:
        col_tile = max(4 * _LANE, (col_tile // 2) // _LANE * _LANE)
    return rows_tile, col_tile


def _choose_rows_fold(B: int, S: int, D: int, itemsize: int):
    """Row (sequence) tile for the (B, S, D) layout with full-D blocks."""
    if S <= 8:
        rows_tile = S
    else:
        rows_budget = max(8, _TARGET_BLOCK_BYTES // (D * itemsize))
        rows_tile = max(8, min(S, _MAX_ROWS_FULL_WIDTH, rows_budget) // 8 * 8)
    # Grid-depth guard (grid = (cdiv(S, rows_tile), B)).
    while (pl.cdiv(S, rows_tile) * B) < _MIN_GRID_STEPS and rows_tile >= 16 and rows_tile % 8 == 0:
        rows_tile = max(8, (rows_tile // 2) // 8 * 8)
    return rows_tile


def _forward_flat(x2d, pos2d, rows_tile, col_tile, *, donate_x, itemsize):
    B, n_cols = x2d.shape
    grid = (pl.cdiv(n_cols, col_tile), pl.cdiv(B, rows_tile))   # rows innermost
    kwargs = {}
    if donate_x:
        kwargs["input_output_aliases"] = {0: 0}
    return pl.pallas_call(
        _pos_add_kernel,
        out_shape=jax.ShapeDtypeStruct((B, n_cols), x2d.dtype),
        grid_spec=pltpu.PrefetchScalarGridSpec(
            num_scalar_prefetch=0,
            grid=grid,
            in_specs=[
                pl.BlockSpec((rows_tile, col_tile), lambda c, r: (r, c)),
                # pos block is independent of the inner (row) axis -> stays resident.
                pl.BlockSpec((1, col_tile), lambda c, r: (0, c)),
            ],
            out_specs=pl.BlockSpec((rows_tile, col_tile), lambda c, r: (r, c)),
        ),
        compiler_params=pltpu.CompilerParams(
            dimension_semantics=("parallel", "parallel"),
            vmem_limit_bytes=_VMEM_LIMIT_BYTES,
        ),
        cost_estimate=pl.CostEstimate(
            flops=B * n_cols,
            transcendentals=0,
            bytes_accessed=2 * B * n_cols * itemsize + n_cols * itemsize,
        ),
        **kwargs,
    )(x2d, pos2d)


def _forward_fold(x, pos_sd, rows_tile, *, donate_x, itemsize):
    B, S, D = x.shape
    grid = (pl.cdiv(S, rows_tile), B)   # batch innermost -> pos block stays resident
    kwargs = {}
    if donate_x:
        kwargs["input_output_aliases"] = {0: 0}
    return pl.pallas_call(
        _pos_add_kernel,
        out_shape=jax.ShapeDtypeStruct((B, S, D), x.dtype),
        grid_spec=pltpu.PrefetchScalarGridSpec(
            num_scalar_prefetch=0,
            grid=grid,
            in_specs=[
                pl.BlockSpec((1, rows_tile, D), lambda s, b: (b, s, 0)),
                pl.BlockSpec((rows_tile, D), lambda s, b: (s, 0)),
            ],
            out_specs=pl.BlockSpec((1, rows_tile, D), lambda s, b: (b, s, 0)),
        ),
        compiler_params=pltpu.CompilerParams(
            dimension_semantics=("parallel", "parallel"),
            vmem_limit_bytes=_VMEM_LIMIT_BYTES,
        ),
        cost_estimate=pl.CostEstimate(
            flops=B * S * D,
            transcendentals=0,
            bytes_accessed=2 * B * S * D * itemsize + S * D * itemsize,
        ),
        **kwargs,
    )(x, pos_sd)


def positional_encoding_forward(x, pos_table, *, donate_x=False, _pos_cache=None):
    """x: (B, S, D); pos_table: (n_position, D)  ->  x + pos_table[None, :S, :]."""
    B, S, D = x.shape
    n_position, Dt = pos_table.shape
    if Dt != D:
        raise ValueError(f"pos_table hidden dim {Dt} != input hidden dim {D}")
    if S > n_position:
        raise ValueError(f"sequence length {S} exceeds n_position {n_position}")

    itemsize = int(np.dtype(x.dtype).itemsize)
    use_fold = (B < 8) and (D % _LANE == 0)
    cache_key = ("fold" if use_fold else "flat", S, np.dtype(x.dtype).name)
    pos_op = None if _pos_cache is None else _pos_cache.get(cache_key)

    if use_fold:
        if pos_op is None:
            pos_op = pos_table[:S, :].astype(x.dtype)                    # (S, D)
            if _pos_cache is not None and not isinstance(pos_op, jax.core.Tracer):
                _pos_cache[cache_key] = pos_op
        rows_tile = _choose_rows_fold(B, S, D, itemsize)
        return _forward_fold(x, pos_op, rows_tile, donate_x=donate_x, itemsize=itemsize)

    n_cols = S * D
    x2d = x.reshape(B, n_cols)                                           # free layout plumbing
    if pos_op is None:
        pos_op = pos_table[:S, :].astype(x.dtype).reshape(1, n_cols)     # (1, S*D)
        if _pos_cache is not None and not isinstance(pos_op, jax.core.Tracer):
            _pos_cache[cache_key] = pos_op
    rows_tile, col_tile = _choose_tiles_flat(B, n_cols, itemsize)
    out2d = _forward_flat(x2d, pos_op, rows_tile, col_tile, donate_x=donate_x, itemsize=itemsize)
    return out2d.reshape(B, S, D)


class PositionalEncoding:
    """Forward-only Pallas counterpart of the PyTorch module."""

    def __init__(self, dim_hid: int, n_position: int = 200):
        self.pos_table = _get_sinusoid_encoding_table(n_position, dim_hid)
        self._pos_cache = {}   # prepared pos operands keyed by (layout, S, dtype)

    def __call__(self, x, *, donate_x=False):
        return positional_encoding_forward(
            x, self.pos_table, donate_x=donate_x, _pos_cache=self._pos_cache
        )


if __name__ == "__main__":
    key = jax.random.PRNGKey(0)
    k1, k2 = jax.random.split(key)

    # Case 1: small batch, narrow hidden (flat layout: D % 128 != 0).
    B1, S1, D1, P1 = 2, 8, 32, 200
    enc1 = PositionalEncoding(D1, n_position=P1)
    x1 = jax.random.normal(k1, (B1, S1, D1), dtype=jnp.float32)
    out1 = jax.block_until_ready(enc1(x1))
    ref1 = x1 + enc1.pos_table[None, :S1, :]
    np.testing.assert_allclose(np.asarray(out1), np.asarray(ref1), rtol=1e-6, atol=1e-6)

    # Case 2: batch < 8 with lane-aligned hidden (fold layout: sublane-full blocks).
    B2, S2, D2, P2 = 1, 16, 128, 200
    enc2 = PositionalEncoding(D2, n_position=P2)
    x2 = jax.random.normal(k2, (B2, S2, D2), dtype=jnp.float32)
    out2 = jax.block_until_ready(enc2(x2))
    ref2 = x2 + enc2.pos_table[None, :S2, :]
    np.testing.assert_allclose(np.asarray(out2), np.asarray(ref2), rtol=1e-6, atol=1e-6)

    print("KERNEL_OK")
</pallas_src>

<mosaic_0001>
module attributes {stable_mosaic.version = 11 : i64} {
  func.func @_pos_add_kernel(%arg0: i32, %arg1: i32, %arg2: memref<2x256xf32, #tpu.memory_space<vmem>>, %arg3: memref<1x256xf32, #tpu.memory_space<vmem>>, %arg4: memref<2x256xf32, #tpu.memory_space<vmem>>) attributes {dimension_semantics = [#tpu.dimension_semantics<parallel>, #tpu.dimension_semantics<parallel>], iteration_bounds = array<i64: 1, 1>, scalar_prefetch = 0 : i64, scratch_operands = 0 : i64, tpu.core_type = #tpu.core_type<tc>, window_params = [{transform_indices = @transform_0, window_bounds = array<i64: 2, 256>}, {transform_indices = @transform_1, window_bounds = array<i64: 1, 256>}, {transform_indices = @transform_2, window_bounds = array<i64: 2, 256>}]} {
    %c0 = arith.constant 0 : index
    %c0_0 = arith.constant 0 : index
    %0 = vector.load %arg2[%c0, %c0_0] : memref<2x256xf32, #tpu.memory_space<vmem>>, vector<2x256xf32>
    %c0_1 = arith.constant 0 : index
    %c0_2 = arith.constant 0 : index
    %1 = vector.load %arg3[%c0_1, %c0_2] : memref<1x256xf32, #tpu.memory_space<vmem>>, vector<1x256xf32>
    %2 = vector.broadcast %1 : vector<1x256xf32> to vector<2x256xf32>
    %3 = arith.addf %0, %2 : vector<2x256xf32>
    %c0_3 = arith.constant 0 : index
    %c0_4 = arith.constant 0 : index
    %4 = vector.load %arg4[%c0_3, %c0_4] : memref<2x256xf32, #tpu.memory_space<vmem>>, vector<2x256xf32>
    tpu.vector_store %arg4[%c0_3, %c0_4], %3 {strides = array<i32>} : memref<2x256xf32, #tpu.memory_space<vmem>>, vector<2x256xf32>,
    return
  }
  func.func @transform_0(%arg0: i32, %arg1: i32) -> (i32, i32) {
    %c0_i32 = arith.constant 0 : i32
    return %arg1, %arg0 : i32, i32
  }
  func.func @transform_1(%arg0: i32, %arg1: i32) -> (i32, i32) {
    %c0_i32 = arith.constant 0 : i32
    %c0_i32_0 = arith.constant 0 : i32
    return %c0_i32, %arg0 : i32, i32
  }
  func.func @transform_2(%arg0: i32, %arg1: i32) -> (i32, i32) {
    %c0_i32 = arith.constant 0 : i32
    return %arg1, %arg0 : i32, i32
  }
}

</mosaic_0001>

<bundles_post_ra>
// kernel: tpu_custom_call.1
= control target key start
LH: loop header
LB: loop body
LE: loop exit
PB: predicated region body
PF: predicated region fallthrough
CT: control target
= control target key end

     0   :  { %7 = vsyncpa [#allocation3], 0  ;;  %s157_s0 = inlined_call_operand.hbm [shape: f32[2,256], index: 0, kind: input, shape index: {}]   ;;  %s158_s1 = inlined_call_operand.vmem [shape: f32[1,256], index: 1, kind: input, shape index: {}]   ;;  %s159_s2 = inlined_call_operand.hbm [shape: f32[2,256], index: 2, kind: output, shape index: {}]  }
   0x1   :  { %8 = vsyncpa [#allocation4], 0  ;;  %s112_s9 = smov [#allocation2]   ;;  %s64_s13 = scalar_lea.hbm %s157_s0, 64 }
   0x2   :  { %s15_s10 = sshll.u32 %s112_s9, 4  ;;  %p65_p0 = scmp.ne.s32.totalorder %s157_s0, %s64_s13  ;;  %s16_s10 = int_to_ptr.vmem [resolvable:$true] %s15_s10 }
   0x3   :  { %p68_p1 = scmp.lt.u32.totalorder %s64_s13, %s157_s0 }
   0x5   :  { %p70_p2 = pnand %p68_p1, %p65_p0 }
   0x7   :  { %73 = shalt.err (!%p70_p2)
}
   0x8   :  { %s74_s18 = scalar_lea.vmem %s16_s10, 64  ;;  %p79_p4 = scmp.lt.s32.totalorder %s16_s10, %s16_s10 }
   0x9   :  { %p75_p3 = scmp.ne.s32.totalorder %s16_s10, %s74_s18  ;;  %p80_p5 = scmp.lt.s32.totalorder %s74_s18, %s74_s18 }
   0xb   :  { %p81_p6 = por %p80_p5, %p79_p4 }
   0xd   :  { %p82_p7 = pnand %p81_p6, %p75_p3 }
   0xf   :  { %85 = shalt.err (!%p82_p7)
}
  0x10   :  { %18 = dma.hbm_to_vmem [thread:$0]  %s157_s0, 64, %s16_s10, [#allocation3]  }
  0x11   :  { %108 = dma.done.wait [#allocation3], 64  }
  0x12   :  { %109 = vsyncadd [#allocation3], 4294967232  ;;  %v27_v0 = vlaneseq  ;;  %v113_v1 = vmov 1983009808   ;;  %v25_v7 = vld [vmem:[%s158_s1] sm:$0x3] }
  0x13   :  { %v37_v2 = vunpack.c.l.s4 %v113_v1  ;;  %v24_v12 = vld [vmem:[#allocation2] sm:$0xf]  ;;  %s114_s23 = smov [#allocation5]  }
  0x14   :  { %v28_v3 = vshrl.u32 %v27_v0, 7  ;;  %s52_s0 = sshll.u32 %s114_s23, 4  ;;  %s53_s0 = int_to_ptr.vmem [resolvable:$true] %s52_s0 }
  0x15   :  { %v38_v6 = vunpack.c.0.s8 %v37_v2  ;;  %s86_s24 = scalar_lea.vmem %s53_s0, 64  ;;  %p91_p9 = scmp.lt.s32.totalorder %s53_s0, %s53_s0 }
  0x16   :  { %v29_v4 = vsub.s32 0, %v28_v3  ;;  %v33_v5 = vsub.s32 1, %v28_v3  ;;  %p87_p8 = scmp.ne.s32.totalorder %s53_s0, %s86_s24  ;;  %p92_p10 = scmp.lt.s32.totalorder %s86_s24, %s86_s24 }
  0x17   :  { %v41_v10 = vsub.s32 %v38_v6, %v28_v3 }
  0x18   :  { %v30_v8 = vrot.slane %v25_v7, %v29_v4  ;;  %v34_v9 = vrot.slane %v25_v7, %v33_v5  ;;  %p93_p11 = por %p92_p10, %p91_p9 }
  0x1a   :  { %v35_v11 = vcombine.low %v30_v8, %v34_v9  ;;  %p94_p12 = pnand %p93_p11, %p87_p8 }
  0x1c   :  { %v42_v13 = vrot.slane %v35_v11, %v41_v10 }
  0x1e   :  { %v44_v14 = vadd.f32 %v42_v13, %v24_v12 }
  0x20   :  { %45 = vst [vmem:[#allocation5] sm:$0xf] %v44_v14 }
  0x21   :  { %97 = shalt.err (!%p94_p12)
}
  0x22   :  { %s98_s26 = scalar_lea.hbm %s159_s2, 64 }
  0x23   :  { %p99_p13 = scmp.ne.s32.totalorder %s159_s2, %s98_s26  ;;  %p102_p0 = scmp.lt.u32.totalorder %s98_s26, %s159_s2 }
  0x25   :  { %p104_p1 = pnand %p102_p0, %p99_p13 }
  0x27   :  { %107 = shalt.err (!%p104_p1)
}
  0x28   :  { %55 = dma.vmem_to_hbm [thread:$0]  %s53_s0, 64, %s159_s2, [#allocation4]  }
  0x29   :  { %110 = dma.done.wait [#allocation4], 64  }
  0x2a   :  { %111 = vsyncadd [#allocation4], 4294967232 }
  0x2b   :  { %59 = vsyncpa [#allocation3], 1 }
  0x2c   :  { %60 = vsyncpa [#allocation4], 1 }

</bundles_post_ra>
